<compile_context>
chip_gen: v7x
topology: tpu7x:2x2x1
jax: 0.10.0
libtpu: 0.0.40
codegen_flags: <defaults>
</compile_context>

<pallas_src>
import math
from functools import partial

import jax
import jax.numpy as jnp
from jax import lax
from jax.experimental import pallas as pl
from jax.experimental.pallas import tpu as pltpu

_INV_SQRT2 = 1.0 / math.sqrt(2.0)


def _round_up(x: int, m: int) -> int:
    return ((x + m - 1) // m) * m


def _cdiv(a: int, b: int) -> int:
    return -(-a // b)


# --------------------------------------------------------------------------- #
# Kernels
# --------------------------------------------------------------------------- #
def _mlp_kernel(x_ref, w1_ref, b1_ref, w2_ref, b2_ref, o_ref, *, mm_dtype):
    """Single-pass MLP: W1 fully VMEM-resident."""
    # x arrives in its source dtype; cast per-tile (no extra HBM pass).
    x = x_ref[...].astype(mm_dtype)
    # [TM, H] @ [H, H/2] -> f32 accumulation on the MXU.
    h = jnp.dot(x, w1_ref[...], preferred_element_type=jnp.float32)
    h = h + b1_ref[...]                                  # b1: [1, H/2] f32
    # Exact GELU (PyTorch default, approximate='none').
    h = 0.5 * h * (1.0 + lax.erf(h * _INV_SQRT2))
    # [TM, H/2] @ [H/2, L_pad] -> lane-dense output.
    out = jnp.dot(h.astype(mm_dtype), w2_ref[...], preferred_element_type=jnp.float32)
    o_ref[...] = (out + b2_ref[...]).astype(o_ref.dtype)


def _mlp_kernel_ksplit(x_ref, w1_ref, b1_ref, w2_ref, b2_ref, o_ref, acc_ref,
                       *, mm_dtype):
    """Large-hidden fallback: grid=(row_tiles, k_tiles); hidden (K) tiled with
    an f32 accumulator; GELU + second matmul run once at the last K step."""
    k = pl.program_id(1)

    @pl.when(k == 0)
    def _init():
        acc_ref[...] = jnp.zeros_like(acc_ref)

    x = x_ref[...].astype(mm_dtype)
    acc_ref[...] += jnp.dot(x, w1_ref[...], preferred_element_type=jnp.float32)

    @pl.when(k == pl.num_programs(1) - 1)
    def _finalize():
        h = acc_ref[...] + b1_ref[...]
        h = 0.5 * h * (1.0 + lax.erf(h * _INV_SQRT2))
        out = jnp.dot(h.astype(mm_dtype), w2_ref[...],
                      preferred_element_type=jnp.float32)
        o_ref[...] = (out + b2_ref[...]).astype(o_ref.dtype)


# --------------------------------------------------------------------------- #
# Sizing helpers
# --------------------------------------------------------------------------- #
def _vmem_budget_bytes() -> int:
    """Per-generation VMEM budget with ~25% headroom for compiler scratch."""
    cap = None
    try:
        cap = getattr(pltpu.get_tpu_info(), "vmem_capacity_bytes", None)
    except Exception:
        cap = None
    if not cap or cap <= 0:
        cap = 64 * 1024 * 1024  # conservative fallback (v7x per-TC VMEM)
    return (int(cap) * 3) // 4   # 48 MiB on v7x, 96 MiB on v5e/v6e


def _choose_tm(m: int, tm_cap: int, use_bf16: bool):
    """Row tile: budget-capped, packing/MXU aligned, even tile count when
    there is enough work so v7x's two TensorCores both get row tiles."""
    if m >= 4096:
        align = 256
    elif m >= 1024:
        align = 128
    else:
        align = 16 if use_bf16 else 8
    if m <= align:
        return m, 1                      # full dim -> exempt from (8,128) rule
    tm_cap = max(align, min(int(tm_cap), 1024))
    tm_cap = (tm_cap // align) * align
    tiles = _cdiv(m, tm_cap)
    if tiles % 2 == 1 and m >= 256:      # prefer an even split for 2 TCs (v7x)
        tiles += 1
    tm = min(_round_up(_cdiv(m, tiles), align), tm_cap)
    if tm >= m:
        return m, 1
    return tm, _cdiv(m, tm)


# --------------------------------------------------------------------------- #
# Wrapper
# --------------------------------------------------------------------------- #
def classifier_forward(queries, w1, b1, w2, b2, *, use_bf16=True, force_k_tiles=None):
    """queries: [..., features_num, hidden_size] -> [..., features_num, labels_num]

    w1: [hidden, hidden//2], b1: [hidden//2], w2: [hidden//2, labels], b2: [labels]
    (weights stored [in, out], i.e. transposed from PyTorch's [out, in]).
    """
    *lead, hidden = queries.shape
    mid = w1.shape[1]
    labels_num = w2.shape[1]

    m = 1
    for d in lead:
        m *= int(d)

    out_dtype = queries.dtype
    mm_dtype = jnp.bfloat16 if use_bf16 else queries.dtype
    x_itemsize = jnp.dtype(queries.dtype).itemsize
    mm_itemsize = jnp.dtype(mm_dtype).itemsize
    out_itemsize = jnp.dtype(out_dtype).itemsize

    # ---- wrapper-side layout prep (weights only; x stays in source dtype) ----
    x2d = queries.reshape(m, hidden)
    l_pad = _round_up(labels_num, 128)   # lane-dense output (exact: zero pad)
    w1c = w1.astype(mm_dtype)
    b1r = b1.reshape(1, mid).astype(jnp.float32)
    w2p = jnp.zeros((mid, l_pad), mm_dtype).at[:, :labels_num].set(w2.astype(mm_dtype))
    b2p = jnp.zeros((1, l_pad), jnp.float32).at[0, :labels_num].set(b2.astype(jnp.float32))

    budget = _vmem_budget_bytes()

    # ---- decide whether W1 can stay fully VMEM-resident -----------------------
    use_ksplit = False
    tk = hidden
    if force_k_tiles is not None and int(force_k_tiles) > 1:
        kt = int(force_k_tiles)
        assert hidden % kt == 0 and (hidden // kt) % 128 == 0, \
            "forced K tiling needs hidden to split into multiples of 128"
        tk = hidden // kt
        use_ksplit = True
    elif hidden % 128 == 0 and hidden * mid * mm_itemsize > budget // 3:
        use_ksplit = True
        tk = max(128, ((budget // 4) // max(1, 2 * mid * mm_itemsize)) // 128 * 128)
        tk = min(hidden, tk)
        while hidden % tk != 0:          # terminates at 128 (hidden % 128 == 0)
            tk -= 128

    # ---- VMEM accounting -> row tile size -------------------------------------
    if use_ksplit:
        resident = (mid * l_pad * mm_itemsize + (mid + l_pad) * 4
                    + 2 * tk * mid * mm_itemsize)          # double-buffered W1 blocks
        per_row = (2 * tk * x_itemsize                      # double-buffered x blocks
                   + 2 * l_pad * out_itemsize               # double-buffered out
                   + 2 * mid * 4                            # f32 acc + GELU temp
                   + l_pad * 4)
    else:
        resident = ((hidden * mid + mid * l_pad) * mm_itemsize
                    + (mid + l_pad) * 4)                    # single-buffered weights
        per_row = (2 * hidden * x_itemsize
                   + 2 * l_pad * out_itemsize
                   + mid * 4                                # f32 GELU intermediate
                   + l_pad * 4)
    avail = max(budget - resident, budget // 8)
    tm, num_row_tiles = _choose_tm(m, avail // max(1, per_row), use_bf16)

    # ---- specs -----------------------------------------------------------------
    resident_spec = pl.BlockSpec(memory_space=pltpu.MemorySpace.VMEM)
    if use_ksplit:
        kernel = partial(_mlp_kernel_ksplit, mm_dtype=mm_dtype)
        grid = (num_row_tiles, hidden // tk)
        in_specs = [
            pl.BlockSpec((tm, tk), lambda i, k: (i, k)),     # x: rows x K-chunk
            pl.BlockSpec((tk, mid), lambda i, k: (k, 0)),    # W1: K-chunk (pipelined)
            resident_spec,                                   # b1
            resident_spec,                                   # W2 (padded)
            resident_spec,                                   # b2
        ]
        out_specs = pl.BlockSpec((tm, l_pad), lambda i, k: (i, 0))
        scratch_shapes = [pltpu.VMEM((tm, mid), jnp.float32)]
        dim_sem = ("parallel", "arbitrary")
    else:
        kernel = partial(_mlp_kernel, mm_dtype=mm_dtype)
        grid = (num_row_tiles,)
        in_specs = [
            pl.BlockSpec((tm, hidden), lambda i: (i, 0)),    # x: row-tiled, pipelined
            resident_spec,                                   # W1 (single VMEM copy)
            resident_spec,                                   # b1
            resident_spec,                                   # W2 (padded)
            resident_spec,                                   # b2
        ]
        out_specs = pl.BlockSpec((tm, l_pad), lambda i: (i, 0))
        scratch_shapes = []
        dim_sem = ("parallel",)

    cost = pl.CostEstimate(
        flops=2 * m * hidden * mid + 2 * m * mid * l_pad,
        transcendentals=m * mid,
        bytes_accessed=(m * hidden * x_itemsize
                        + hidden * mid * mm_itemsize
                        + mid * l_pad * mm_itemsize
                        + m * l_pad * out_itemsize),
    )

    out2d = pl.pallas_call(
        kernel,
        out_shape=jax.ShapeDtypeStruct((m, l_pad), out_dtype),
        grid=grid,
        in_specs=in_specs,
        out_specs=out_specs,
        scratch_shapes=scratch_shapes,
        compiler_params=pltpu.CompilerParams(
            dimension_semantics=dim_sem,
            vmem_limit_bytes=int(budget),   # <= 75% of physical VMEM per generation
        ),
        cost_estimate=cost,
    )(x2d, w1c, b1r, w2p, b2p)

    # Drop the label padding and restore leading dims.
    return out2d[:, :labels_num].reshape(*lead, labels_num)


# --------------------------------------------------------------------------- #
# Reference / params / test
# --------------------------------------------------------------------------- #
def init_classifier_params(key, hidden_size, types_num, additional_none=True):
    """Deterministic synthetic parameters matching the PyTorch module shapes."""
    labels_num = types_num + (1 if additional_none else 0)
    mid = hidden_size // 2
    k1, k2, k3, k4 = jax.random.split(key, 4)
    w1 = jax.random.normal(k1, (hidden_size, mid), jnp.float32) * (1.0 / math.sqrt(hidden_size))
    b1 = jax.random.normal(k2, (mid,), jnp.float32) * 0.01
    w2 = jax.random.normal(k3, (mid, labels_num), jnp.float32) * (1.0 / math.sqrt(mid))
    b2 = jax.random.normal(k4, (labels_num,), jnp.float32) * 0.01
    return w1, b1, w2, b2


def _reference(queries, w1, b1, w2, b2):
    *lead, hidden = queries.shape
    x = queries.reshape(-1, hidden)
    h = x @ w1 + b1
    h = 0.5 * h * (1.0 + lax.erf(h * _INV_SQRT2))
    return (h @ w2 + b2).reshape(*lead, w2.shape[1])


if __name__ == "__main__":
    key = jax.random.PRNGKey(0)
    kx, kp, kx2, kp2 = jax.random.split(key, 4)

    # Small shapes consistent with forward(): [batch, features_num, hidden_size]
    batch, features_num, hidden_size = 2, 8, 32
    types_num = 5  # labels_num = 6 with additional_none=True

    queries = jax.random.normal(kx, (batch, features_num, hidden_size), jnp.float32)
    w1, b1, w2, b2 = init_classifier_params(kp, hidden_size, types_num)
    ref = _reference(queries, w1, b1, w2, b2)

    # 1) Exact f32 path (parity with the module's numerics).
    out_f32 = jax.block_until_ready(classifier_forward(queries, w1, b1, w2, b2, use_bf16=False))
    assert out_f32.shape == (batch, features_num, types_num + 1), out_f32.shape
    assert jnp.allclose(out_f32, ref, atol=1e-5, rtol=1e-5)

    # 2) Default fast path: bf16 matmul operands, f32 accumulation.
    out_bf16 = jax.block_until_ready(classifier_forward(queries, w1, b1, w2, b2, use_bf16=True))
    assert out_bf16.shape == (batch, features_num, types_num + 1), out_bf16.shape
    assert jnp.allclose(out_bf16, ref, atol=2e-2, rtol=2e-2)

    # 3) Exercise the large-hidden (K-split) fallback path on a small problem.
    hidden2 = 256
    queries2 = jax.random.normal(kx2, (batch, features_num, hidden2), jnp.float32)
    w1b, b1b, w2b, b2b = init_classifier_params(kp2, hidden2, types_num)
    ref2 = _reference(queries2, w1b, b1b, w2b, b2b)
    out_ks = jax.block_until_ready(
        classifier_forward(queries2, w1b, b1b, w2b, b2b, use_bf16=False, force_k_tiles=2))
    assert out_ks.shape == (batch, features_num, types_num + 1), out_ks.shape
    assert jnp.allclose(out_ks, ref2, atol=1e-4, rtol=1e-4)

    print("KERNEL_OK")
</pallas_src>

<mosaic_0001>
module attributes {stable_mosaic.version = 11 : i64} {
  func.func @_mlp_kernel(%arg0: i32, %arg1: memref<16x32xf32, #tpu.memory_space<vmem>>, %arg2: memref<32x16xf32, #tpu.memory_space<vmem>>, %arg3: memref<1x16xf32, #tpu.memory_space<vmem>>, %arg4: memref<16x128xf32, #tpu.memory_space<vmem>>, %arg5: memref<1x128xf32, #tpu.memory_space<vmem>>, %arg6: memref<16x128xf32, #tpu.memory_space<vmem>>) attributes {dimension_semantics = [#tpu.dimension_semantics<parallel>], iteration_bounds = array<i64: 1>, scalar_prefetch = 0 : i64, scratch_operands = 0 : i64, tpu.core_type = #tpu.core_type<tc>, window_params = [{transform_indices = @transform_0, window_bounds = array<i64: 16, 32>}, {pipeline_mode = #tpu.pipeline_mode<synchronous>, transform_indices = @transform_1, window_bounds = array<i64: 32, 16>}, {pipeline_mode = #tpu.pipeline_mode<synchronous>, transform_indices = @transform_2, window_bounds = array<i64: 1, 16>}, {pipeline_mode = #tpu.pipeline_mode<synchronous>, transform_indices = @transform_3, window_bounds = array<i64: 16, 128>}, {pipeline_mode = #tpu.pipeline_mode<synchronous>, transform_indices = @transform_4, window_bounds = array<i64: 1, 128>}, {transform_indices = @transform_5, window_bounds = array<i64: 16, 128>}]} {
    %c0 = arith.constant 0 : index
    %c0_0 = arith.constant 0 : index
    %0 = vector.load %arg1[%c0, %c0_0] : memref<16x32xf32, #tpu.memory_space<vmem>>, vector<16x32xf32>
    %c0_1 = arith.constant 0 : index
    %c0_2 = arith.constant 0 : index
    %1 = vector.load %arg2[%c0_1, %c0_2] : memref<32x16xf32, #tpu.memory_space<vmem>>, vector<32x16xf32>
    %cst = arith.constant dense<0.000000e+00> : vector<16x16xf32>
    %2 = tpu.matmul %0, %1, %cst {dimension_numbers = #tpu.dot_dimension_numbers<[1], [0], [0], [1], [0, 0, 1, 1], [], []>} : vector<16x32xf32>, vector<32x16xf32>, vector<16x16xf32> -> vector<16x16xf32>
    %c0_3 = arith.constant 0 : index
    %c0_4 = arith.constant 0 : index
    %3 = vector.load %arg3[%c0_3, %c0_4] : memref<1x16xf32, #tpu.memory_space<vmem>>, vector<1x16xf32>
    %4 = vector.broadcast %3 : vector<1x16xf32> to vector<16x16xf32>
    %5 = arith.addf %2, %4 : vector<16x16xf32>
    %cst_5 = arith.constant 5.000000e-01 : f32
    %6 = vector.broadcast %cst_5 : f32 to vector<16x16xf32>
    %7 = arith.mulf %6, %5 : vector<16x16xf32>
    %cst_6 = arith.constant 0.707106769 : f32
    %8 = vector.broadcast %cst_6 : f32 to vector<16x16xf32>
    %9 = arith.mulf %5, %8 : vector<16x16xf32>
    %10 = math.erf %9 : vector<16x16xf32>
    %cst_7 = arith.constant 1.000000e+00 : f32
    %11 = vector.broadcast %cst_7 : f32 to vector<16x16xf32>
    %12 = arith.addf %11, %10 : vector<16x16xf32>
    %13 = arith.mulf %7, %12 : vector<16x16xf32>
    %c0_8 = arith.constant 0 : index
    %c0_9 = arith.constant 0 : index
    %14 = vector.load %arg4[%c0_8, %c0_9] : memref<16x128xf32, #tpu.memory_space<vmem>>, vector<16x128xf32>
    %cst_10 = arith.constant dense<0.000000e+00> : vector<16x128xf32>
    %15 = tpu.matmul %13, %14, %cst_10 {dimension_numbers = #tpu.dot_dimension_numbers<[1], [0], [0], [1], [0, 0, 1, 1], [], []>} : vector<16x16xf32>, vector<16x128xf32>, vector<16x128xf32> -> vector<16x128xf32>
    %c0_11 = arith.constant 0 : index
    %c0_12 = arith.constant 0 : index
    %16 = vector.load %arg5[%c0_11, %c0_12] : memref<1x128xf32, #tpu.memory_space<vmem>>, vector<1x128xf32>
    %17 = vector.broadcast %16 : vector<1x128xf32> to vector<16x128xf32>
    %18 = arith.addf %15, %17 : vector<16x128xf32>
    %c0_13 = arith.constant 0 : index
    %c0_14 = arith.constant 0 : index
    %19 = vector.load %arg6[%c0_13, %c0_14] : memref<16x128xf32, #tpu.memory_space<vmem>>, vector<16x128xf32>
    tpu.vector_store %arg6[%c0_13, %c0_14], %18 {strides = array<i32>} : memref<16x128xf32, #tpu.memory_space<vmem>>, vector<16x128xf32>,
    return
  }
  func.func @transform_0(%arg0: i32) -> (i32, i32) {
    %c0_i32 = arith.constant 0 : i32
    %c0_i32_0 = arith.constant 0 : i32
    return %arg0, %c0_i32 : i32, i32
  }
  func.func @transform_1(%arg0: i32) -> (i32, i32) {
    %c0_i32 = arith.constant 0 : i32
    %c0_i32_0 = arith.constant 0 : i32
    %c0_i32_1 = arith.constant 0 : i32
    return %c0_i32, %c0_i32_0 : i32, i32
  }
  func.func @transform_2(%arg0: i32) -> (i32, i32) {
    %c0_i32 = arith.constant 0 : i32
    %c0_i32_0 = arith.constant 0 : i32
    %c0_i32_1 = arith.constant 0 : i32
    return %c0_i32, %c0_i32_0 : i32, i32
  }
  func.func @transform_3(%arg0: i32) -> (i32, i32) {
    %c0_i32 = arith.constant 0 : i32
    %c0_i32_0 = arith.constant 0 : i32
    %c0_i32_1 = arith.constant 0 : i32
    return %c0_i32, %c0_i32_0 : i32, i32
  }
  func.func @transform_4(%arg0: i32) -> (i32, i32) {
    %c0_i32 = arith.constant 0 : i32
    %c0_i32_0 = arith.constant 0 : i32
    %c0_i32_1 = arith.constant 0 : i32
    return %c0_i32, %c0_i32_0 : i32, i32
  }
  func.func @transform_5(%arg0: i32) -> (i32, i32) {
    %c0_i32 = arith.constant 0 : i32
    %c0_i32_0 = arith.constant 0 : i32
    return %arg0, %c0_i32 : i32, i32
  }
}

</mosaic_0001>

<bundles_post_ra>
// kernel: tpu_custom_call.1
= control target key start
LH: loop header
LB: loop body
LE: loop exit
PB: predicated region body
PF: predicated region fallthrough
CT: control target
= control target key end

     0   :  { %vm34_vm0 = vcmask 261120   ;;  %s387_s0 = inlined_call_operand.vmem [shape: f32[16,32], index: 0, kind: input, shape index: {}]   ;;  %s388_s1 = inlined_call_operand.vmem [shape: f32[32,16], index: 1, kind: input, shape index: {}]   ;;  %s389_s2 = inlined_call_operand.vmem [shape: f32[1,16], index: 2, kind: input, shape index: {}]   ;;  %s390_s3 = inlined_call_operand.vmem [shape: f32[16,128], index: 3, kind: input, shape index: {}]   ;;  %s391_s4 = inlined_call_operand.vmem [shape: f32[1,128], index: 4, kind: input, shape index: {}]   ;;  %s392_s5 = inlined_call_operand.hbm [shape: f32[16,128], index: 5, kind: output, shape index: {}]  }
   0x1   :  { %v23_v0 = vld [vmem:[%s388_s1] sm:$0xff]  ;;  %v24_v1 = vld [vmem:[%s388_s1 + $0x8] sm:$0xff]  ;;  %v25_v2 = vld [vmem:[%s388_s1 + $0x10] sm:$0xff] }
   0x2   :  { %v269_v3 = vpack.c.bf16 %v24_v1, %v23_v0  ;;  %v26_v4 = vld [vmem:[%s388_s1 + $0x18] sm:$0xff]  ;;  %v21_v5 = vld [vmem:[%s387_s0] sm:$0xff] }
   0x3   :  { %v273_v6 = vpack.c.bf16 %v26_v4, %v25_v2  ;;  %259 = vmatprep.mubr.msk.f32.mxu0 %vm34_vm0, %v21_v5 }
   0x4   :  { %10 = vsyncpa [#allocation3], 0  ;;  %270 = vmatprep.subr.bf16.mxu0 %v269_v3  ;;  %v22_v7 = vld [vmem:[%s387_s0 + $0x8] sm:$0xff]  ;;  %v126_v8 = vld [vmem:[%s390_s3] sm:$0xff]  ;;  %vm135_vm1 = vcmask 130048  }
   0x5   :  { %272 = vmatpush3.bf16.msra.mxu0 %v269_v3  ;;  %v127_v9 = vld [vmem:[%s390_s3 + $0x8] sm:$0xff]  ;;  %v235_v11 = vld [vmem:[%s389_s2] ss:$0 sm:$0xff]  ;;  %s312_s3 = smov [#allocation2]  }
   0x6   :  { %274 = vmatprep.subr.bf16.mxu0 %v273_v6  ;;  %v277_v10 = vpack.c.bf16 %v127_v9, %v126_v8  ;;  %v238_v26 = vld [vmem:[%s391_s4] ss:$0 sm:$0xff]  ;;  %s224_s10 = sshll.u32 %s312_s3, 4  ;;  %s225_s10 = int_to_ptr.vmem [resolvable:$true] %s224_s10 }
   0x7   :  { %s288_s11 = scalar_lea.vmem %s225_s10, 256  ;;  %p293_p1 = scmp.lt.s32.totalorder %s225_s10, %s225_s10 }
   0x8   :  { %278 = vmatprep.subr.bf16.mxu1 %v277_v10  ;;  %p289_p0 = scmp.ne.s32.totalorder %s225_s10, %s288_s11  ;;  %p294_p2 = scmp.lt.s32.totalorder %s288_s11, %s288_s11 }
   0x9   :  { %276 = vmatpush3.bf16.msra.mxu0 %v273_v6  ;;  %280 = vmatpush3.bf16.msra.mxu1 %v277_v10 }
   0xa   :  { %p295_p3 = por %p294_p2, %p293_p1 }
   0xc   :  { %260 = vmatmul.mubr.msk.f32.vlgmr.msra.gmra.mrb[0].mxu0 %vm34_vm0, %v22_v7  ;;  %p296_p4 = pnand %p295_p3, %p289_p0 }
  0xdf   :  { %v261_v12 = vpop.f32.mrb[0].mxu0 }
  0xe0   :  { %v113_v13 = vadd.f32 %v261_v12, %v235_v11  ;;  %v107_v14 = vpop.f32.mrb[1].mxu0 }
  0xe1   :  { %v108_v15 = vadd.f32 %v235_v11, %v107_v14 }
  0xe2   :  { %v119_v16 = vmul.f32 0.70710677, %v113_v13  ;;  %v117_v23 = vmul.f32 0.5, %v113_v13 }
  0xe3   :  { %v118_v17 = vmul.f32 0.70710677, %v108_v15  ;;  %v116_v21 = vmul.f32 0.5, %v108_v15 }
  0xe4   :  { %284 = verf.f32 %v119_v16 }
  0xe5   :  { %286 = verf.f32 %v118_v17 }
  0xee   :  { %v285_v18 = vpop.eup %284 }
  0xef   :  { %v287_v19 = vpop.eup %286  ;;  %v123_v20 = vadd.f32 1.0, %v285_v18 }
  0xf0   :  { %v122_v22 = vadd.f32 1.0, %v287_v19 }
  0xf1   :  { %v125_v25 = vmul.f32 %v123_v20, %v117_v23 }
  0xf2   :  { %v124_v24 = vmul.f32 %v122_v22, %v116_v21 }
  0xf4   :  { %266 = vmatprep.mubr.msk.f32.mxu1 %vm135_vm1, %v124_v24 }
  0xf5   :  { %267 = vmatmul.mubr.msk.f32.vlgmr.msra.gmra.mrb[0].mxu1 %vm135_vm1, %v125_v25 }
 0x1c8   :  { %v268_v27 = vpop.f32.mrb[0].mxu1 }
 0x1c9   :  { %v214_v28 = vadd.f32 %v268_v27, %v238_v26  ;;  %v208_v29 = vpop.f32.mrb[1].mxu1 }
 0x1ca   :  { %v209_v30 = vadd.f32 %v238_v26, %v208_v29 }
 0x1cb   :  { %218 = vst [vmem:[#allocation2 + $0x8] sm:$0xff] %v214_v28 }
 0x1cc   :  { %217 = vst [vmem:[#allocation2] sm:$0xff] %v209_v30 }
 0x1cd   :  { %299 = shalt.err (!%p296_p4)
}
 0x1ce   :  { %s300_s4 = scalar_lea.hbm %s392_s5, 256 }
 0x1cf   :  { %p301_p5 = scmp.ne.s32.totalorder %s392_s5, %s300_s4  ;;  %p304_p6 = scmp.lt.u32.totalorder %s300_s4, %s392_s5 }
 0x1d1   :  { %p306_p7 = pnand %p304_p6, %p301_p5 }
 0x1d3   :  { %309 = shalt.err (!%p306_p7)
}
 0x1d4   :  { %s313_s18 = smov 128   ;;  %s314_s19 = smov 8  }
 0x1d5   :  { %230 = dma.vmem_to_hbm [thread:$0]  %s225_s10, 256, %s392_s5, [#allocation3], %s313_s18, %s313_s18, %s314_s19  }
 0x1d6   :  { %310 = dma.done.wait [#allocation3], 256  }
 0x1d7   :  { %311 = vsyncadd [#allocation3], 4294967040 }
 0x1d8   :  { %234 = vsyncpa [#allocation3], 1 }

</bundles_post_ra>
